<compile_context>
chip_gen: v7x
topology: tpu7x:2x2x1
jax: 0.10.0
libtpu: 0.0.40
codegen_flags: <defaults>
</compile_context>

<pallas_src>
import functools
import math

import jax
import jax.numpy as jnp
from jax.experimental import pallas as pl
from jax.experimental.pallas import tpu as pltpu

_LANES = 128
_SUBLANES = 8
_MAX_CHUNK_ROWS = 2048  # 2048*128*4B = 1 MiB per input tile; 4 MiB double-buffered.


def _tversky_kernel(yp_ref, yt_ref, out_ref, acc_int, acc_p, acc_t, *, beta, smooth):
    c = pl.program_id(1)

    @pl.when(c == 0)
    def _init():
        acc_int[...] = jnp.zeros_like(acc_int)
        acc_p[...] = jnp.zeros_like(acc_p)
        acc_t[...] = jnp.zeros_like(acc_t)

    yp = yp_ref[0].astype(jnp.float32)  # (t_rows, 128)
    yt = yt_ref[0].astype(jnp.float32)

    t_rows = yp.shape[0]
    yp3 = yp.reshape(t_rows // _SUBLANES, _SUBLANES, _LANES)
    yt3 = yt.reshape(t_rows // _SUBLANES, _SUBLANES, _LANES)

    # Keep partials in vreg shape: steady-state work is pure VALU adds, the
    # cross-lane/sublane reduce happens only once per sample (below).
    acc_int[...] += jnp.sum(yt3 * yp3, axis=0)
    acc_p[...] += jnp.sum(yp3, axis=0)
    acc_t[...] += jnp.sum(yt3, axis=0)

    @pl.when(c == pl.num_programs(1) - 1)
    def _finalize():
        s_int = jnp.sum(acc_int[...])
        s_p = jnp.sum(acc_p[...])
        s_t = jnp.sum(acc_t[...])
        # inter + beta*(S_p - inter) + (1-beta)*(S_t - inter)
        #   == beta*S_p + (1-beta)*S_t
        denom = beta * s_p + (1.0 - beta) * s_t + smooth
        coef = (s_int + smooth) / denom
        out_ref[...] = jnp.full(out_ref.shape, 1.0 - coef, dtype=out_ref.dtype)


def tversky_loss(y_predict, y_true, *, beta=0.3, smooth=1.0):
    """Pallas implementation of Tversky_Loss(beta).forward(y_predict, y_true)."""
    assert y_predict.shape == y_true.shape
    N = y_predict.shape[0]
    D = math.prod(y_predict.shape[1:])

    # Lane-dense layout: flatten each sample to rows of 128 lanes, rows a
    # multiple of 8 sublanes, then chunk the row axis for the inner grid.
    rows = -(-D // _LANES)
    rows = -(-rows // _SUBLANES) * _SUBLANES
    t_rows = min(rows, _MAX_CHUNK_ROWS)
    rows = -(-rows // t_rows) * t_rows
    d_pad = rows * _LANES

    def _prep(x):
        x = x.reshape(N, D)
        if d_pad > D:
            # Zero padding contributes 0 to S_int/S_p/S_t -> result unchanged.
            x = jnp.pad(x, ((0, 0), (0, d_pad - D)))
        return x.reshape(N, rows, _LANES)

    yp = _prep(y_predict)
    yt = _prep(y_true)

    kernel = functools.partial(
        _tversky_kernel, beta=float(beta), smooth=float(smooth)
    )

    per_sample = pl.pallas_call(
        kernel,
        out_shape=jax.ShapeDtypeStruct((N, _SUBLANES, _LANES), jnp.float32),
        grid_spec=pltpu.PrefetchScalarGridSpec(
            num_scalar_prefetch=0,
            grid=(N, rows // t_rows),
            in_specs=[
                pl.BlockSpec((1, t_rows, _LANES), lambda b, c: (b, c, 0)),
                pl.BlockSpec((1, t_rows, _LANES), lambda b, c: (b, c, 0)),
            ],
            out_specs=pl.BlockSpec((1, _SUBLANES, _LANES), lambda b, c: (b, 0, 0)),
            scratch_shapes=[pltpu.VMEM((_SUBLANES, _LANES), jnp.float32)] * 3,
        ),
        compiler_params=pltpu.CompilerParams(
            # Batch axis can be split across TensorCores (v7x); only the inner
            # reduction axis carries the scratch accumulators.
            dimension_semantics=("parallel", "arbitrary"),
        ),
    )(yp, yt)

    # per_sample[i, 0, 0] == 1 - coef_i ; final mean (== sum/N) in the wrapper.
    return jnp.mean(per_sample[:, 0, 0])


def _tversky_loss_ref(y_predict, y_true, *, beta=0.3, smooth=1.0):
    """Pure-JAX reference matching the PyTorch forward."""
    N = y_true.shape[0]
    total = 0.0
    for i in range(N):
        yt = y_true[i].astype(jnp.float32)
        yp = y_predict[i].astype(jnp.float32)
        inter = jnp.sum(yt * yp)
        i1 = beta * jnp.sum((1.0 - yt) * yp)
        i2 = (1.0 - beta) * jnp.sum(yt * (1.0 - yp))
        total = total + (1.0 - (inter + smooth) / (inter + i1 + i2 + smooth))
    return total / N


if __name__ == "__main__":
    key = jax.random.PRNGKey(0)

    # Test 1: shapes where a sample maps exactly onto (8, 128) slabs.
    k1, k2, k3, k4 = jax.random.split(key, 4)
    N, C, H, W = 2, 4, 16, 16
    y_predict = jax.random.uniform(k1, (N, C, H, W), dtype=jnp.float32)
    y_true = (jax.random.uniform(k2, (N, C, H, W)) > 0.5).astype(jnp.float32)

    loss = jax.block_until_ready(tversky_loss(y_predict, y_true, beta=0.3))
    ref = _tversky_loss_ref(y_predict, y_true, beta=0.3)
    assert jnp.allclose(loss, ref, rtol=1e-5, atol=1e-6), (loss, ref)

    # Test 2: odd spatial size -> exercises the zero-padding path.
    N2, C2, H2, W2 = 3, 4, 15, 15
    y_predict2 = jax.random.uniform(k3, (N2, C2, H2, W2), dtype=jnp.float32)
    y_true2 = (jax.random.uniform(k4, (N2, C2, H2, W2)) > 0.5).astype(jnp.float32)

    loss2 = jax.block_until_ready(tversky_loss(y_predict2, y_true2, beta=0.3))
    ref2 = _tversky_loss_ref(y_predict2, y_true2, beta=0.3)
    assert jnp.allclose(loss2, ref2, rtol=1e-5, atol=1e-6), (loss2, ref2)

    print("KERNEL_OK")
</pallas_src>

<mosaic_0001>
module attributes {stable_mosaic.version = 11 : i64} {
  func.func @_tversky_kernel(%arg0: i32, %arg1: i32, %arg2: memref<1x8x128xf32, #tpu.memory_space<vmem>>, %arg3: memref<1x8x128xf32, #tpu.memory_space<vmem>>, %arg4: memref<1x8x128xf32, #tpu.memory_space<vmem>>, %arg5: memref<8x128xf32, #tpu.memory_space<vmem>>, %arg6: memref<8x128xf32, #tpu.memory_space<vmem>>, %arg7: memref<8x128xf32, #tpu.memory_space<vmem>>) attributes {dimension_semantics = [#tpu.dimension_semantics<parallel>, #tpu.dimension_semantics<arbitrary>], iteration_bounds = array<i64: 2, 1>, scalar_prefetch = 0 : i64, scratch_operands = 3 : i64, tpu.core_type = #tpu.core_type<tc>, window_params = [{transform_indices = @transform_0, window_bounds = array<i64: 1, 8, 128>}, {transform_indices = @transform_1, window_bounds = array<i64: 1, 8, 128>}, {transform_indices = @transform_2, window_bounds = array<i64: 1, 8, 128>}]} {
    %c0_i32 = arith.constant 0 : i32
    %0 = arith.cmpi eq, %arg1, %c0_i32 : i32
    %1 = arith.extui %0 : i1 to i32
    %c0_i32_0 = arith.constant 0 : i32
    %2 = arith.cmpi ne, %1, %c0_i32_0 : i32
    scf.if %2 {
      %cst_22 = arith.constant 0.000000e+00 : f32
      %25 = vector.broadcast %cst_22 : f32 to vector<8x128xf32>
      %c0_23 = arith.constant 0 : index
      %c0_24 = arith.constant 0 : index
      %26 = vector.load %arg5[%c0_23, %c0_24] : memref<8x128xf32, #tpu.memory_space<vmem>>, vector<8x128xf32>
      tpu.vector_store %arg5[%c0_23, %c0_24], %25 {strides = array<i32>} : memref<8x128xf32, #tpu.memory_space<vmem>>, vector<8x128xf32>,
      %cst_25 = arith.constant 0.000000e+00 : f32
      %27 = vector.broadcast %cst_25 : f32 to vector<8x128xf32>
      %c0_26 = arith.constant 0 : index
      %c0_27 = arith.constant 0 : index
      %28 = vector.load %arg6[%c0_26, %c0_27] : memref<8x128xf32, #tpu.memory_space<vmem>>, vector<8x128xf32>
      tpu.vector_store %arg6[%c0_26, %c0_27], %27 {strides = array<i32>} : memref<8x128xf32, #tpu.memory_space<vmem>>, vector<8x128xf32>,
      %cst_28 = arith.constant 0.000000e+00 : f32
      %29 = vector.broadcast %cst_28 : f32 to vector<8x128xf32>
      %c0_29 = arith.constant 0 : index
      %c0_30 = arith.constant 0 : index
      %30 = vector.load %arg7[%c0_29, %c0_30] : memref<8x128xf32, #tpu.memory_space<vmem>>, vector<8x128xf32>
      tpu.vector_store %arg7[%c0_29, %c0_30], %29 {strides = array<i32>} : memref<8x128xf32, #tpu.memory_space<vmem>>, vector<8x128xf32>,
    } else {
    }
    %c0 = arith.constant 0 : index
    %c0_1 = arith.constant 0 : index
    %c0_2 = arith.constant 0 : index
    %3 = vector.load %arg2[%c0, %c0_1, %c0_2] : memref<1x8x128xf32, #tpu.memory_space<vmem>>, vector<1x8x128xf32>
    %4 = vector.shape_cast %3 : vector<1x8x128xf32> to vector<8x128xf32>
    %c0_3 = arith.constant 0 : index
    %c0_4 = arith.constant 0 : index
    %c0_5 = arith.constant 0 : index
    %5 = vector.load %arg3[%c0_3, %c0_4, %c0_5] : memref<1x8x128xf32, #tpu.memory_space<vmem>>, vector<1x8x128xf32>
    %6 = vector.shape_cast %5 : vector<1x8x128xf32> to vector<8x128xf32>
    %7 = vector.shape_cast %4 : vector<8x128xf32> to vector<1x8x128xf32>
    %8 = vector.shape_cast %6 : vector<8x128xf32> to vector<1x8x128xf32>
    %c0_6 = arith.constant 0 : index
    %c0_7 = arith.constant 0 : index
    %9 = vector.load %arg5[%c0_6, %c0_7] : memref<8x128xf32, #tpu.memory_space<vmem>>, vector<8x128xf32>
    %10 = arith.mulf %8, %7 : vector<1x8x128xf32>
    %cst = arith.constant dense<0.000000e+00> : vector<8x128xf32>
    %11 = vector.multi_reduction <add>, %10, %cst [0] : vector<1x8x128xf32> to vector<8x128xf32>
    %12 = arith.addf %9, %11 : vector<8x128xf32>
    %c0_8 = arith.constant 0 : index
    %c0_9 = arith.constant 0 : index
    %13 = vector.load %arg5[%c0_8, %c0_9] : memref<8x128xf32, #tpu.memory_space<vmem>>, vector<8x128xf32>
    tpu.vector_store %arg5[%c0_8, %c0_9], %12 {strides = array<i32>} : memref<8x128xf32, #tpu.memory_space<vmem>>, vector<8x128xf32>,
    %c0_10 = arith.constant 0 : index
    %c0_11 = arith.constant 0 : index
    %14 = vector.load %arg6[%c0_10, %c0_11] : memref<8x128xf32, #tpu.memory_space<vmem>>, vector<8x128xf32>
    %cst_12 = arith.constant dense<0.000000e+00> : vector<8x128xf32>
    %15 = vector.multi_reduction <add>, %7, %cst_12 [0] : vector<1x8x128xf32> to vector<8x128xf32>
    %16 = arith.addf %14, %15 : vector<8x128xf32>
    %c0_13 = arith.constant 0 : index
    %c0_14 = arith.constant 0 : index
    %17 = vector.load %arg6[%c0_13, %c0_14] : memref<8x128xf32, #tpu.memory_space<vmem>>, vector<8x128xf32>
    tpu.vector_store %arg6[%c0_13, %c0_14], %16 {strides = array<i32>} : memref<8x128xf32, #tpu.memory_space<vmem>>, vector<8x128xf32>,
    %c0_15 = arith.constant 0 : index
    %c0_16 = arith.constant 0 : index
    %18 = vector.load %arg7[%c0_15, %c0_16] : memref<8x128xf32, #tpu.memory_space<vmem>>, vector<8x128xf32>
    %cst_17 = arith.constant dense<0.000000e+00> : vector<8x128xf32>
    %19 = vector.multi_reduction <add>, %8, %cst_17 [0] : vector<1x8x128xf32> to vector<8x128xf32>
    %20 = arith.addf %18, %19 : vector<8x128xf32>
    %c0_18 = arith.constant 0 : index
    %c0_19 = arith.constant 0 : index
    %21 = vector.load %arg7[%c0_18, %c0_19] : memref<8x128xf32, #tpu.memory_space<vmem>>, vector<8x128xf32>
    tpu.vector_store %arg7[%c0_18, %c0_19], %20 {strides = array<i32>} : memref<8x128xf32, #tpu.memory_space<vmem>>, vector<8x128xf32>,
    %c0_i32_20 = arith.constant 0 : i32
    %22 = arith.cmpi eq, %arg1, %c0_i32_20 : i32
    %23 = arith.extui %22 : i1 to i32
    %c0_i32_21 = arith.constant 0 : i32
    %24 = arith.cmpi ne, %23, %c0_i32_21 : i32
    scf.if %24 {
      %c0_22 = arith.constant 0 : index
      %c0_23 = arith.constant 0 : index
      %25 = vector.load %arg5[%c0_22, %c0_23] : memref<8x128xf32, #tpu.memory_space<vmem>>, vector<8x128xf32>
      %26 = vector.shape_cast %25 : vector<8x128xf32> to vector<1x8x128xf32>
      %cst_24 = arith.constant dense<0.000000e+00> : vector<1xf32>
      %27 = vector.multi_reduction <add>, %26, %cst_24 [1, 2] : vector<1x8x128xf32> to vector<1xf32>
      %28 = vector.shape_cast %27 : vector<1xf32> to vector<1x1x1xf32>
      %29 = vector.extract %28[0, 0, 0] : f32 from vector<1x1x1xf32>
      %c0_25 = arith.constant 0 : index
      %c0_26 = arith.constant 0 : index
      %30 = vector.load %arg6[%c0_25, %c0_26] : memref<8x128xf32, #tpu.memory_space<vmem>>, vector<8x128xf32>
      %31 = vector.shape_cast %30 : vector<8x128xf32> to vector<1x8x128xf32>
      %cst_27 = arith.constant dense<0.000000e+00> : vector<1xf32>
      %32 = vector.multi_reduction <add>, %31, %cst_27 [1, 2] : vector<1x8x128xf32> to vector<1xf32>
      %33 = vector.shape_cast %32 : vector<1xf32> to vector<1x1x1xf32>
      %34 = vector.extract %33[0, 0, 0] : f32 from vector<1x1x1xf32>
      %c0_28 = arith.constant 0 : index
      %c0_29 = arith.constant 0 : index
      %35 = vector.load %arg7[%c0_28, %c0_29] : memref<8x128xf32, #tpu.memory_space<vmem>>, vector<8x128xf32>
      %36 = vector.shape_cast %35 : vector<8x128xf32> to vector<1x8x128xf32>
      %cst_30 = arith.constant dense<0.000000e+00> : vector<1xf32>
      %37 = vector.multi_reduction <add>, %36, %cst_30 [1, 2] : vector<1x8x128xf32> to vector<1xf32>
      %38 = vector.shape_cast %37 : vector<1xf32> to vector<1x1x1xf32>
      %39 = vector.extract %38[0, 0, 0] : f32 from vector<1x1x1xf32>
      %cst_31 = arith.constant 3.000000e-01 : f32
      %40 = arith.mulf %cst_31, %34 : f32
      %cst_32 = arith.constant 0.699999988 : f32
      %41 = arith.mulf %cst_32, %39 : f32
      %42 = arith.addf %40, %41 : f32
      %cst_33 = arith.constant 1.000000e+00 : f32
      %43 = arith.addf %42, %cst_33 : f32
      %cst_34 = arith.constant 1.000000e+00 : f32
      %44 = arith.addf %29, %cst_34 : f32
      %45 = arith.divf %44, %43 : f32
      %cst_35 = arith.constant 1.000000e+00 : f32
      %46 = arith.subf %cst_35, %45 : f32
      %47 = vector.broadcast %46 : f32 to vector<1x8x128xf32>
      %c0_36 = arith.constant 0 : index
      %c0_37 = arith.constant 0 : index
      %c0_38 = arith.constant 0 : index
      %48 = vector.load %arg4[%c0_36, %c0_37, %c0_38] : memref<1x8x128xf32, #tpu.memory_space<vmem>>, vector<1x8x128xf32>
      tpu.vector_store %arg4[%c0_36, %c0_37, %c0_38], %47 {strides = array<i32>} : memref<1x8x128xf32, #tpu.memory_space<vmem>>, vector<1x8x128xf32>,
    } else {
    }
    return
  }
  func.func @transform_0(%arg0: i32, %arg1: i32) -> (i32, i32, i32) {
    %c0_i32 = arith.constant 0 : i32
    %c0_i32_0 = arith.constant 0 : i32
    return %arg0, %arg1, %c0_i32 : i32, i32, i32
  }
  func.func @transform_1(%arg0: i32, %arg1: i32) -> (i32, i32, i32) {
    %c0_i32 = arith.constant 0 : i32
    %c0_i32_0 = arith.constant 0 : i32
    return %arg0, %arg1, %c0_i32 : i32, i32, i32
  }
  func.func @transform_2(%arg0: i32, %arg1: i32) -> (i32, i32, i32) {
    %c0_i32 = arith.constant 0 : i32
    %c0_i32_0 = arith.constant 0 : i32
    %c0_i32_1 = arith.constant 0 : i32
    return %arg0, %c0_i32, %c0_i32_0 : i32, i32, i32
  }
}

</mosaic_0001>

<bundles_post_ra>
// kernel: tpu_custom_call.1
= control target key start
LH: loop header
LB: loop body
LE: loop exit
PB: predicated region body
PF: predicated region fallthrough
CT: control target
= control target key end

     0   :  { %7 = vsyncpa [#allocation6], 0  ;;  %s882_s0 = inlined_call_operand.hbm [shape: f32[2,8,128], index: 0, kind: input, shape index: {}]   ;;  %s883_s1 = inlined_call_operand.hbm [shape: f32[2,8,128], index: 1, kind: input, shape index: {}]   ;;  %s884_s2 = inlined_call_operand.hbm [shape: f32[2,8,128], index: 2, kind: output, shape index: {}]  }
   0x1   :  { %9 = vsyncpa [#allocation6 + $0x1], 0 }
   0x2   :  { %10 = vsyncpa [#allocation9], 0 }
   0x3   :  { %12 = vsyncpa [#allocation9 + $0x1], 0 }
   0x4   :  { %13 = vsyncpa [#allocation7], 0 }
   0x5   :  { %15 = vsyncpa [#allocation7 + $0x1], 0  ;;  %s657_s9 = smov 0   ;;  %s659_s10 = smov 0  }
   0x6   :  { %s661_s11 = smov 0   ;;  %s663_s12 = smov 0  }
   0x7   :  { %s665_s13 = smov 0   ;;  %s667_s14 = smov 0  }
   0x8 LB: > { %s398_s15 = sadd.s32 4294967295, %s637_s14   ;;  %s399_s16 = sadd.s32 4294967294, %s637_s14   ;;  %s637_s14 = sphi %s667_s14, %s21_s14   ;;  %s633_s13 = sphi %s665_s13, %s904_s13   ;;  %s629_s12 = sphi %s663_s12, %s903_s12   ;;  %s625_s11 = sphi %s661_s11, %s902_s11   ;;  %s621_s10 = sphi %s659_s10, %s901_s10   ;;  %s617_s9 = sphi %s657_s9, %s900_s9  }
   0x9   : > { %s33_s17 = sadd.s32 1, %s633_s13  ;;  %s42_s18 = sadd.s32 1, %s625_s11 }
   0xa   : > { %p35_p0 = scmp.ge.s32.totalorder %s33_s17, 2  ;;  %p49_p1 = scmp.ne.s32.totalorder %s625_s11, %s621_s10 }
   0xb   : > { %p50_p2 = scmp.eq.s32.totalorder %s637_s14, 0  ;;  %p55_p3 = scmp.ne.s32.totalorder %s621_s10, %s617_s9 }
   0xc   : > { %s906_s17 = smov (%p35_p0, %s33_s17), 0  ;;  %p56_p5 = scmp.eq.s32.totalorder %s398_s15, 0 }
   0xd   : > { %p698_p4 = por %p50_p2, %p49_p1  ;;  %s37_s20 = ssub.s32 %s633_s13, %s906_s17 }
   0xe   : > { %p107_p6 = scmp.eq.s32.totalorder %s398_s15, 1  ;;  %p40_p7 = scmp.eq.s32.totalorder %s37_s20, 0 }
   0xf   : > { %p704_p8 = por %p56_p5, %p55_p3  ;;  %p113_p10 = scmp.eq.s32.totalorder %s399_s16, 1 }
  0x10   : > { %p708_p9 = por %p107_p6, %p49_p1  ;;  %p439_p13 = scmp.lt.s32.totalorder %s637_s14, 2 }
  0x11   : > { %s888_s21 = scalar_select %p704_p8, 1, 0 }
  0x12   : > { %s889_s22 = scalar_select %p708_p9, 1, 0 }
  0x13   : > { %s713_s23 = scalar_select %p40_p7, %s625_s11, %s42_s18  }
  0x14   : > { %p715_p11 = por %p113_p10, %p55_p3  ;;  %s722_s25 = sand.u32 1, %s625_s11  }
  0x15   : > { %s402_s26 = sshll.u32 %s722_s25, 3  ;;  %s403_s27 = sshll.u32 %s633_s13, 7 }
  0x16   : > { %s890_s24 = scalar_select %p715_p11, 1, 0 }
  0x17   : > { %s731_s30 = scalar_lea.hbm %s882_s0, %s403_s27  ;;  %s137_s3 = scalar_lea.vmem [#allocation5], %s402_s26 }
  0x18   : > { %s145_s4 = sshll.u32 %s137_s3, 4  ;;  %p739_p0 = pnand %p439_p13, %p698_p4  ;;  %s735_s4 = int_to_ptr.vmem [resolvable:$true] %s145_s4 }
  0x19   : > { %s134_s6 = scalar_lea.sflag [#allocation6], %s722_s25  ;;  %s491_s7 = scalar_lea.hbm %s731_s30, 128 }
  0x1a   : > { %p492_p3 = scmp.ne.s32.totalorder %s731_s30, %s491_s7  ;;  %p493_p5 = pneg %p739_p0 }
  0x1b   : > { %s496_s16 = scalar_lea.hbm %s882_s0, 256  ;;  %p497_p4 = scmp.lt.u32.totalorder %s731_s30, %s882_s0 }
  0x1c   : > { %p494_p6 = pnand %p493_p5, %p492_p3  ;;  %p498_p10 = scmp.lt.u32.totalorder %s496_s16, %s491_s7 }
  0x1d   : > { %p500_p12 = scmp.lt.u32.totalorder %s491_s7, %s731_s30 }
  0x1e   : > { %p495_p7 = pneg %p494_p6  ;;  %p499_p13 = por %p498_p10, %p497_p4 }
  0x20   : > { %p501_p1 = por %p500_p12, %p499_p13 }
  0x22   : > { %p502_p2 = pnand %p501_p1, %p495_p7 }
  0x24   : > { %505 = shalt.err (!%p502_p2)
}
  0x25   : > { %s506_s20 = scalar_lea.vmem %s735_s4, 128  ;;  %s639_s28 = smov [#allocation5]  }
  0x26   : > { %p507_p3 = scmp.ne.s32.totalorder %s735_s4, %s506_s20  ;;  %s511_s29 = sshll.u32 %s639_s28, 4  ;;  %s512_s29 = int_to_ptr.vmem [resolvable:$false] %s511_s29 }
  0x27   : > { %s513_s3 = scalar_lea.vmem %s512_s29, 256  ;;  %p514_p9 = scmp.lt.s32.totalorder %s735_s4, %s512_s29 }
  0x28   : > { %p509_p6 = pnand %p507_p3, %p493_p5  ;;  %p515_p4 = scmp.lt.s32.totalorder %s513_s3, %s506_s20 }
  0x2a   : > { %p510_p11 = pneg %p509_p6  ;;  %p516_p10 = por %p515_p4, %p514_p9 }
  0x2c   : > { %p517_p12 = pnand %p516_p10, %p510_p11 }
  0x2e   : > { %520 = shalt.err (!%p517_p12)
}
  0x2f   : > { %431 = dma.hbm_to_vmem [thread:$0]  (!%p739_p0), %s731_s30, 128, %s735_s4, %s134_s6  }
  0x30   : > { %p892_p1 = scmp.lt.s32.totalorder %s637_s14, 3  ;;  %p893_p2 = scmp.ge.s32.totalorder %s637_s14, 1 }
  0x31   : > { %s784_s16 = scalar_lea.hbm %s883_s1, %s403_s27  ;;  %s156_s18 = scalar_lea.vmem [#allocation8], %s402_s26 }
  0x32   : > { %p775_p7 = pnand %p893_p2, %p892_p1  ;;  %s164_s19 = sshll.u32 %s156_s18, 4  ;;  %s165_s19 = int_to_ptr.vmem [resolvable:$true] %s164_s19 }
  0x33   : > { %s153_s30 = scalar_lea.sflag [#allocation9], %s722_s25  ;;  %s521_s4 = scalar_lea.hbm %s784_s16, 128 }
  0x34   : > { %s894_s7 = scalar_select %p775_p7, 1, 0 }
  0x35   : > { %p522_p9 = scmp.ne.s32.totalorder %s784_s16, %s521_s4  ;;  %s526_s27 = scalar_lea.hbm %s883_s1, 256 }
  0x36   : > { %p527_p3 = scmp.lt.u32.totalorder %s784_s16, %s883_s1  ;;  %p528_p6 = scmp.lt.u32.totalorder %s526_s27, %s521_s4 }
  0x37   : > { %p524_p11 = pnand %p522_p9, %p493_p5  ;;  %p530_p10 = scmp.lt.u32.totalorder %s521_s4, %s784_s16 }
  0x38   : > { %p529_p4 = por %p528_p6, %p527_p3 }
  0x39   : > { %p525_p13 = pneg %p524_p11 }
  0x3a   : > { %p531_p12 = por %p530_p10, %p529_p4 }
  0x3c   : > { %p532_p1 = pnand %p531_p12, %p525_p13 }
  0x3e   : > { %535 = shalt.err (!%p532_p1)
}
  0x3f   : > { %s536_s25 = scalar_lea.vmem %s165_s19, 128  ;;  %s640_s26 = smov [#allocation8]  }
  0x40   : > { %p537_p2 = scmp.ne.s32.totalorder %s165_s19, %s536_s25  ;;  %s541_s3 = sshll.u32 %s640_s26, 4  ;;  %s542_s3 = int_to_ptr.vmem [resolvable:$false] %s541_s3 }
  0x41   : > { %s543_s8 = scalar_lea.vmem %s542_s3, 256  ;;  %p544_p8 = scmp.lt.s32.totalorder %s165_s19, %s542_s3 }
  0x42   : > { %p539_p9 = pnand %p537_p2, %p493_p5  ;;  %p545_p7 = scmp.lt.s32.totalorder %s543_s8, %s536_s25 }
  0x44   : > { %p540_p11 = pneg %p539_p9  ;;  %p546_p3 = por %p545_p7, %p544_p8 }
  0x46   : > { %p547_p6 = pnand %p546_p3, %p540_p11 }
  0x48   : > { %550 = shalt.err (!%p547_p6)
}
  0x49   : > { %434 = dma.hbm_to_vmem [thread:$0]  (!%p739_p0), %s784_s16, 128, %s165_s19, %s153_s30  }
  0x4a   : > { %p895_p13 = scmp.ne.s32.totalorder %s894_s7, 0 }
  0x4b   : > { %s811_s15 = sand.u32 (!%p895_p13), 1, %s621_s10   ;;  %p896_p8 = scmp.ne.s32.totalorder (!%p895_p13), %s888_s21, 0 }
  0x4c   : > { %173 = sbr.rel (%p895_p13) target bundleno = 385 (0x181), region = 28  ;;  %s814_s18 = sshll.u32 (!%p895_p13), %s811_s15, 3 }
  0x4d   : > { %s176_s4 = scalar_lea.sflag (!%p895_p13), [#allocation6], %s811_s15  ;;  %s179_s6 = scalar_lea.vmem (!%p895_p13), [#allocation5], %s814_s18 }
  0x53   : > { %604 = dma.done.wait (%p896_p8), %s176_s4, 128  }
  0x54   : > { %606 = vsyncadd (%p896_p8), %s176_s4, 4294967168  ;;  %s185_s5 = scalar_lea.sflag [#allocation9], %s811_s15  ;;  %s188_s7 = scalar_lea.vmem [#allocation8], %s814_s18 }
  0x55   : > { %608 = dma.done.wait (%p896_p8), %s185_s5, 128  }
  0x56   : > { %610 = vsyncadd (%p896_p8), %s185_s5, 4294967168  ;;  %v222_v0 = vld [vmem:[%s188_s7] sm:$0xff]  ;;  %v221_v1 = vld [vmem:[%s179_s6] sm:$0xff]  ;;  %s411_s26 = sshll.u32 %s629_s12, 7  ;;  %s213_s8 = scalar_lea.vmem [#allocation10], %s814_s18 }
  0x57   : > { %260 = vadd.xlane.f32.xlu1 %v222_v0  ;;  %v224_v2 = vmul.f32 %v222_v0, %v221_v1  ;;  %s295_s4 = sshll.u32 %s213_s8, 4  ;;  %p897_p5 = scmp.ne.s32.totalorder %s889_s22, 0  ;;  %s835_s4 = int_to_ptr.vmem [resolvable:$true] %s295_s4 }
  0x58   : > { %s641_s12 = smov [#allocation10]  }
  0x59   : > { %240 = vadd.xlane.f32.xlu0 %v224_v2  ;;  %s555_s18 = sshll.u32 %s641_s12, 4  ;;  %s556_s18 = int_to_ptr.vmem [resolvable:$false] %s555_s18 }
  0x5a   : > { %p558_p10 = scmp.lt.s32.totalorder %s835_s4, %s556_s18 }
  0x5d   : > { %250 = vadd.xlane.f32.xlu0 %v221_v1 }
  0xe4   : > { %v261_v3 = vpop.xlane.xlu1 %260 }
  0xe5   : > { %v262_v4 = vrot.slane %v261_v3, 4 }
  0xe6   : > { %v241_v5 = vpop.xlane.xlu0 %240 }
  0xe7   : > { %v263_v6 = vadd.f32 %v262_v4, %v261_v3  ;;  %v242_v7 = vrot.slane %v241_v5, 4 }
  0xe9   : > { %v243_v8 = vadd.f32 %v242_v7, %v241_v5  ;;  %v264_v9 = vrot.slane %v263_v6, 2 }
  0xea   : > { %v251_v10 = vpop.xlane.xlu0 %250 }
  0xeb   : > { %v244_v11 = vrot.slane %v243_v8, 2  ;;  %v252_v12 = vrot.slane %v251_v10, 4  ;;  %v265_v15 = vadd.f32 %v264_v9, %v263_v6 }
  0xed   : > { %v253_v13 = vadd.f32 %v252_v12, %v251_v10  ;;  %v245_v14 = vadd.f32 %v244_v11, %v243_v8  ;;  %v266_v20 = vrot.slane %v265_v15, 1 }
  0xef   : > { %v254_v16 = vrot.slane %v253_v13, 2  ;;  %v246_v17 = vrot.slane %v245_v14, 1  ;;  %v267_v23 = vadd.f32 %v266_v20, %v265_v15 }
  0xf1   : > { %v255_v18 = vadd.f32 %v254_v16, %v253_v13  ;;  %v247_v19 = vadd.f32 %v246_v17, %v245_v14 }
  0xf3   : > { %414 = vpush %v247_v19  ;;  %v256_v21 = vrot.slane %v255_v18, 1 }
  0xf5   : > { %v257_v22 = vadd.f32 %v256_v21, %v255_v18 }
  0xf7   : > { %416 = vpush %v257_v22 }
  0xf8   : > { %418 = vpush %v267_v23 }
 0x124   : > { %s415_s21 = spop %414 }
 0x125   : > { %s273_s29 = sadd.f32 1.0, %s415_s21  ;;  %s551_s21 = scalar_lea.vmem %s835_s4, 128 }
 0x126   : > { %p552_p0 = scmp.ne.s32.totalorder %s835_s4, %s551_s21 }
 0x128   : > { %s417_s16 = spop %416  ;;  %p553_p7 = pnand %p552_p0, %p897_p5 }
 0x129   : > { %s269_s19 = smul.f32 0.3, %s417_s16  ;;  %s419_s30 = spop %418 }
 0x12a   : > { %s270_s20 = smul.f32 0.7, %s419_s30  ;;  %s833_s16 = scalar_lea.hbm %s884_s2, %s411_s26 }
 0x12b   : > { %p554_p4 = pneg %p553_p7  ;;  %s557_s30 = scalar_lea.vmem %s556_s18, 256 }
 0x12c   : > { %s271_s27 = sadd.f32 %s270_s20, %s269_s19  ;;  %s282_s19 = scalar_lea.sflag [#allocation7], %s811_s15 }
 0x12d   : > { %p559_p12 = scmp.lt.s32.totalorder %s557_s30, %s551_s21 }
 0x12e   : > { %s272_s28 = sadd.f32 1.0, %s271_s27 }
 0x12f   : > { %p560_p1 = por %p559_p12, %p558_p10 }
 0x130   : > { %v274_v24 = vstv %s272_s28 }
 0x131   : > { %489 = vrcp.f32 %v274_v24  ;;  %p561_p2 = pnand %p560_p1, %p554_p4 }
 0x13b   : > { %v490_v25 = vpop.eup %489 }
 0x13c   : > { %420 = vpush %v490_v25 }
 0x16d   : > { %s421_s25 = spop %420 }
 0x16e   : > { %s277_s3 = smul.f32 %s421_s25, %s273_s29 }
 0x170   : > { %s278_s6 = ssub.f32 1.0, %s277_s3 }
 0x172   : > { %v279_v26 = vstv %s278_s6 }
 0x173   : > { %280 = vst [vmem:[%s213_s8] sm:$0xff] %v279_v26 }
 0x174   : > { %564 = shalt.err (!%p561_p2)
}
 0x175   : > { %s565_s15 = scalar_lea.hbm %s833_s16, 128  ;;  %s569_s28 = scalar_lea.hbm %s884_s2, 256 }
 0x176   : > { %p566_p9 = scmp.ne.s32.totalorder %s833_s16, %s565_s15  ;;  %p570_p6 = scmp.lt.u32.totalorder %s833_s16, %s884_s2 }
 0x177   : > { %p571_p13 = scmp.lt.u32.totalorder %s569_s28, %s565_s15  ;;  %p573_p0 = scmp.lt.u32.totalorder %s565_s15, %s833_s16 }
 0x178   : > { %p567_p11 = pnand %p566_p9, %p897_p5 }
 0x179   : > { %p572_p8 = por %p571_p13, %p570_p6 }
 0x17a   : > { %p568_p3 = pneg %p567_p11 }
 0x17b   : > { %p574_p7 = por %p573_p0, %p572_p8 }
 0x17d   : > { %p575_p4 = pnand %p574_p7, %p568_p3 }
 0x17f   : > { %578 = shalt.err (!%p575_p4)
}
 0x180   : > { %426 = dma.vmem_to_hbm [thread:$0]  (%p897_p5), %s835_s4, 128, %s833_s16, %s282_s19  }
 0x181 PF: > { %s307_s26 = sand.u32 1, %s617_s9   ;;  %p898_p10 = scmp.ne.s32.totalorder %s890_s24, 0 }
 0x182   : > { %p899_p12 = scmp.ge.s32.totalorder %s637_s14, 2  ;;  %s308_s3 = scalar_lea.sflag [#allocation7], %s307_s26 }
 0x184   : > { %p436_p1 = pnand %p899_p12, %p898_p10 }
 0x186   : > { %612 = dma.done.wait (!%p436_p1), %s308_s3, 128  }
 0x187   : > { %614 = vsyncadd (!%p436_p1), %s308_s3, 4294967168  ;;  %s21_s14 = sadd.s32 1, %s637_s14   ;;  %s900_s9 = smov %s621_s10 }
 0x188   : > { %p18_p2 = scmp.ge.s32.totalorder %s21_s14, 4   ;;  %s901_s10 = smov %s625_s11 }
 0x189   : > { %s902_s11 = smov %s713_s23  ;;  %s903_s12 = smov %s633_s13 }
 0x18a   : > { %s904_s13 = smov %s906_s17  ;;  %20 = sbr.rel (!%p18_p2) target bundleno = 8 (0x8), region = 94 }
 0x191   :  { %313 = vsyncpa [#allocation6], 1 }
 0x192   :  { %315 = vsyncpa [#allocation6 + $0x1], 1 }
 0x193   :  { %316 = vsyncpa [#allocation9], 1 }
 0x194   :  { %318 = vsyncpa [#allocation9 + $0x1], 1 }
 0x195   :  { %319 = vsyncpa [#allocation7], 1 }
 0x196   :  { %321 = vsyncpa [#allocation7 + $0x1], 1 }

</bundles_post_ra>
